<compile_context>
chip_gen: v7x
topology: tpu7x:2x2x1
jax: 0.10.0
libtpu: 0.0.40
codegen_flags: <defaults>
</compile_context>

<pallas_src>
import jax
import jax.numpy as jnp
from jax import lax
from jax.experimental import pallas as pl
from jax.experimental.pallas import tpu as pltpu


def _build_op_seq(ops: str, window_size):
    """Expand ('c'/'o', k) into the explicit (morph_type, k) sequence."""
    seq = []
    for op, k in zip(ops, window_size):
        if op.lower() == "c":
            seq += [("dilation", int(k)), ("erosion", int(k))]
        elif op.lower() == "o":
            seq += [("erosion", int(k)), ("dilation", int(k))]
        else:
            raise ValueError("Unexpected operation keyword.")
    return tuple(seq)


def _round_up(a, m):
    return (a + m - 1) // m * m


def _make_morph_kernel(op_seq, core_start, core_len, width):
    """Kernel over one (TR, width) tile: apply the full fused morph-op chain.

    The tile layout is [left halo | core (true signal, core_len) | right halo],
    halos hold zeros on entry (wrapper jnp.pad) and are re-zeroed between ops.
    """
    n_ops = len(op_seq)

    def kernel(x_ref, o_ref):
        x = x_ref[...]                                    # (TR, width) float
        idx = lax.broadcasted_iota(jnp.int32, x.shape, 1)
        # Hoisted once, shared by every intermediate re-zero.
        core = (idx >= core_start) & (idx < core_start + core_len)
        zero = jnp.zeros_like(x)

        # Static Python loop: the op chain is fixed at trace time.
        for oi, (morph_type, k) in enumerate(op_seq):
            pad_left = (k - 1) // 2
            combine = jnp.maximum if morph_type == "dilation" else jnp.minimum
            acc = x                                       # d == 0 tap: always valid
            for j in range(k):
                d = j - pad_left
                if d == 0:
                    continue
                # shifted[t] = x[(t + d) mod width]  (lane rotation on the XLU).
                # For core positions t, t+d never wraps (halo >= |d|), and halo
                # positions hold zeros, so the conv's 'same' ZERO padding
                # participates in the max/min exactly as in the PyTorch module.
                shifted = pltpu.roll(x, shift=(-d) % width, axis=1)
                acc = combine(acc, shifted)
            if oi != n_ops - 1:
                # Restore the zero halo so the next op sees fresh zero padding.
                x = jnp.where(core, acc, zero)
            else:
                x = acc                                   # halo garbage sliced off outside

        o_ref[...] = x

    return kernel


def morphological_layer(x, ops: str, window_size):
    """x: (N, C, L) float32 -> (N, C, L), matching zae_engine MorphologicalLayer."""
    assert len(ops) == len(window_size), "The lengths of the arguments must match."
    N, C, L = x.shape
    rows = N * C
    op_seq = _build_op_seq(ops, window_size)

    # --- lane-dense halo layout ----------------------------------------------
    pad_left = max(((k - 1) // 2 for _, k in op_seq), default=0)
    pad_right = max(((k - 1) - (k - 1) // 2 for _, k in op_seq), default=0)
    W = _round_up(pad_left + L + pad_right, 128)          # >= pad_left + L + pad_right

    xr = x.reshape(rows, L)
    xr = jnp.pad(xr, ((0, 0), (pad_left, W - pad_left - L)))   # zero halos

    # --- per-generation row-tile sizing ---------------------------------------
    try:
        vmem_cap = pltpu.get_tpu_info().vmem_capacity_bytes    # 128 MiB v5e/v6e, 64 MiB v7x
    except Exception:
        vmem_cap = 64 * 1024 * 1024
    budget = vmem_cap // 4                     # headroom for compiler scratch / regalloc
    itemsize = xr.dtype.itemsize
    bytes_per_row = W * itemsize
    # Tile-sized live arrays: 2x double-buffered input + 2x output pipeline
    # buffers, plus ~6 unrolled temporaries (x/acc/shifted/zero) and iota/mask.
    n_live = 12
    tr = budget // (n_live * bytes_per_row)
    tr = int(max(8, min(2048, (tr // 8) * 8)))
    if rows <= tr:
        tr = rows                              # single block; full-dim block is always legal
    grid = (pl.cdiv(rows, tr),)

    kernel = _make_morph_kernel(op_seq, pad_left, L, W)

    taps = sum(k for _, k in op_seq)
    cost = pl.CostEstimate(
        flops=int(rows) * int(L) * int(taps),             # ~one max/min per tap per element
        transcendentals=0,
        bytes_accessed=2 * rows * W * itemsize,
    )

    out = pl.pallas_call(
        kernel,
        out_shape=jax.ShapeDtypeStruct((rows, W), xr.dtype),
        grid=grid,
        in_specs=[pl.BlockSpec((tr, W), lambda i: (i, 0))],
        out_specs=pl.BlockSpec((tr, W), lambda i: (i, 0)),
        compiler_params=pltpu.CompilerParams(
            dimension_semantics=("parallel",),            # shard row tiles across TCs (v7x)
            vmem_limit_bytes=int(vmem_cap // 2),
        ),
        cost_estimate=cost,
    )(xr)

    return out[:, pad_left:pad_left + L].reshape(N, C, L)


def _reference_morph(x, ops, window_size):
    """Pure-JAX reference matching the PyTorch module exactly."""
    op_seq = _build_op_seq(ops, window_size)
    L = x.shape[-1]
    for morph_type, k in op_seq:
        pl_ = (k - 1) // 2
        pr_ = (k - 1) - pl_
        xp = jnp.pad(x, ((0, 0), (0, 0), (pl_, pr_)))
        windows = jnp.stack([xp[..., j: j + L] for j in range(k)], axis=0)
        x = windows.max(0) if morph_type == "dilation" else windows.min(0)
    return x


if __name__ == "__main__":
    key = jax.random.PRNGKey(0)
    N, C, L = 2, 4, 16
    x = jax.random.normal(key, (N, C, L), dtype=jnp.float32)

    ops = "co"
    window_size = [3, 5]

    out = jax.block_until_ready(morphological_layer(x, ops, window_size))
    ref = _reference_morph(x, ops, window_size)

    assert out.shape == (N, C, L)
    assert jnp.allclose(out, ref, atol=1e-6), "mismatch vs reference"

    print("KERNEL_OK")
</pallas_src>

<mosaic_0001>
module attributes {stable_mosaic.version = 11 : i64} {
  func.func @kernel(%arg0: i32, %arg1: memref<8x128xf32, #tpu.memory_space<vmem>>, %arg2: memref<8x128xf32, #tpu.memory_space<vmem>>) attributes {dimension_semantics = [#tpu.dimension_semantics<parallel>], iteration_bounds = array<i64: 1>, scalar_prefetch = 0 : i64, scratch_operands = 0 : i64, tpu.core_type = #tpu.core_type<tc>, window_params = [{transform_indices = @transform_0, window_bounds = array<i64: 8, 128>}, {transform_indices = @transform_1, window_bounds = array<i64: 8, 128>}]} {
    %c0 = arith.constant 0 : index
    %c0_0 = arith.constant 0 : index
    %0 = vector.load %arg1[%c0, %c0_0] : memref<8x128xf32, #tpu.memory_space<vmem>>, vector<8x128xf32>
    %1 = tpu.iota {dimensions = array<i32: 1>} : vector<8x128xi32>
    %c2_i32 = arith.constant 2 : i32
    %2 = vector.broadcast %c2_i32 : i32 to vector<8x128xi32>
    %3 = arith.cmpi sge, %1, %2 : vector<8x128xi32>
    %c18_i32 = arith.constant 18 : i32
    %4 = vector.broadcast %c18_i32 : i32 to vector<8x128xi32>
    %5 = arith.cmpi slt, %1, %4 : vector<8x128xi32>
    %6 = arith.andi %3, %5 : vector<8x128xi1>
    %cst = arith.constant 0.000000e+00 : f32
    %7 = vector.broadcast %cst : f32 to vector<8x128xf32>
    %c1_i32 = arith.constant 1 : i32
    %8 = tpu.dynamic_rotate %0 by %c1_i32 dim 1 : vector<8x128xf32>, i32 -> vector<8x128xf32>
    %9 = arith.maximumf %0, %8 : vector<8x128xf32>
    %c127_i32 = arith.constant 127 : i32
    %10 = tpu.dynamic_rotate %0 by %c127_i32 dim 1 : vector<8x128xf32>, i32 -> vector<8x128xf32>
    %11 = arith.maximumf %9, %10 : vector<8x128xf32>
    %12 = arith.select %6, %11, %7 : vector<8x128xi1>, vector<8x128xf32>
    %c1_i32_1 = arith.constant 1 : i32
    %13 = tpu.dynamic_rotate %12 by %c1_i32_1 dim 1 : vector<8x128xf32>, i32 -> vector<8x128xf32>
    %14 = arith.minimumf %12, %13 : vector<8x128xf32>
    %c127_i32_2 = arith.constant 127 : i32
    %15 = tpu.dynamic_rotate %12 by %c127_i32_2 dim 1 : vector<8x128xf32>, i32 -> vector<8x128xf32>
    %16 = arith.minimumf %14, %15 : vector<8x128xf32>
    %17 = arith.select %6, %16, %7 : vector<8x128xi1>, vector<8x128xf32>
    %c2_i32_3 = arith.constant 2 : i32
    %18 = tpu.dynamic_rotate %17 by %c2_i32_3 dim 1 : vector<8x128xf32>, i32 -> vector<8x128xf32>
    %19 = arith.minimumf %17, %18 : vector<8x128xf32>
    %c1_i32_4 = arith.constant 1 : i32
    %20 = tpu.dynamic_rotate %17 by %c1_i32_4 dim 1 : vector<8x128xf32>, i32 -> vector<8x128xf32>
    %21 = arith.minimumf %19, %20 : vector<8x128xf32>
    %c127_i32_5 = arith.constant 127 : i32
    %22 = tpu.dynamic_rotate %17 by %c127_i32_5 dim 1 : vector<8x128xf32>, i32 -> vector<8x128xf32>
    %23 = arith.minimumf %21, %22 : vector<8x128xf32>
    %c126_i32 = arith.constant 126 : i32
    %24 = tpu.dynamic_rotate %17 by %c126_i32 dim 1 : vector<8x128xf32>, i32 -> vector<8x128xf32>
    %25 = arith.minimumf %23, %24 : vector<8x128xf32>
    %26 = arith.select %6, %25, %7 : vector<8x128xi1>, vector<8x128xf32>
    %c2_i32_6 = arith.constant 2 : i32
    %27 = tpu.dynamic_rotate %26 by %c2_i32_6 dim 1 : vector<8x128xf32>, i32 -> vector<8x128xf32>
    %28 = arith.maximumf %26, %27 : vector<8x128xf32>
    %c1_i32_7 = arith.constant 1 : i32
    %29 = tpu.dynamic_rotate %26 by %c1_i32_7 dim 1 : vector<8x128xf32>, i32 -> vector<8x128xf32>
    %30 = arith.maximumf %28, %29 : vector<8x128xf32>
    %c127_i32_8 = arith.constant 127 : i32
    %31 = tpu.dynamic_rotate %26 by %c127_i32_8 dim 1 : vector<8x128xf32>, i32 -> vector<8x128xf32>
    %32 = arith.maximumf %30, %31 : vector<8x128xf32>
    %c126_i32_9 = arith.constant 126 : i32
    %33 = tpu.dynamic_rotate %26 by %c126_i32_9 dim 1 : vector<8x128xf32>, i32 -> vector<8x128xf32>
    %34 = arith.maximumf %32, %33 : vector<8x128xf32>
    %c0_10 = arith.constant 0 : index
    %c0_11 = arith.constant 0 : index
    %35 = vector.load %arg2[%c0_10, %c0_11] : memref<8x128xf32, #tpu.memory_space<vmem>>, vector<8x128xf32>
    tpu.vector_store %arg2[%c0_10, %c0_11], %34 {strides = array<i32>} : memref<8x128xf32, #tpu.memory_space<vmem>>, vector<8x128xf32>,
    return
  }
  func.func @transform_0(%arg0: i32) -> (i32, i32) {
    %c0_i32 = arith.constant 0 : i32
    %c0_i32_0 = arith.constant 0 : i32
    return %arg0, %c0_i32 : i32, i32
  }
  func.func @transform_1(%arg0: i32) -> (i32, i32) {
    %c0_i32 = arith.constant 0 : i32
    %c0_i32_0 = arith.constant 0 : i32
    return %arg0, %c0_i32 : i32, i32
  }
}

</mosaic_0001>

<bundles_post_ra>
// kernel: tpu_custom_call.1
= control target key start
LH: loop header
LB: loop body
LE: loop exit
PB: predicated region body
PF: predicated region fallthrough
CT: control target
= control target key end

     0   :  { %6 = vsyncpa [#allocation3], 0  ;;  %s194_s0 = inlined_call_operand.hbm [shape: f32[8,128], index: 0, kind: input, shape index: {}]   ;;  %s195_s1 = inlined_call_operand.hbm [shape: f32[8,128], index: 1, kind: output, shape index: {}]  }
   0x1   :  { %7 = vsyncpa [#allocation4], 0  ;;  %s136_s6 = smov [#allocation2]   ;;  %s88_s10 = scalar_lea.hbm %s194_s0, 128 }
   0x2   :  { %s14_s7 = sshll.u32 %s136_s6, 4  ;;  %p89_p0 = scmp.ne.s32.totalorder %s194_s0, %s88_s10  ;;  %s15_s7 = int_to_ptr.vmem [resolvable:$true] %s14_s7 }
   0x3   :  { %p92_p1 = scmp.lt.u32.totalorder %s88_s10, %s194_s0 }
   0x5   :  { %p94_p2 = pnand %p92_p1, %p89_p0 }
   0x7   :  { %97 = shalt.err (!%p94_p2)
}
   0x8   :  { %s98_s15 = scalar_lea.vmem %s15_s7, 128  ;;  %p103_p4 = scmp.lt.s32.totalorder %s15_s7, %s15_s7 }
   0x9   :  { %p99_p3 = scmp.ne.s32.totalorder %s15_s7, %s98_s15  ;;  %p104_p5 = scmp.lt.s32.totalorder %s98_s15, %s98_s15 }
   0xb   :  { %p105_p6 = por %p104_p5, %p103_p4 }
   0xd   :  { %p106_p7 = pnand %p105_p6, %p99_p3 }
   0xf   :  { %109 = shalt.err (!%p106_p7)
}
  0x10   :  { %17 = dma.hbm_to_vmem [thread:$0]  %s194_s0, 128, %s15_s7, [#allocation3]  }
  0x11   :  { %132 = dma.done.wait [#allocation3], 128  }
  0x12   :  { %133 = vsyncadd [#allocation3], 4294967168  ;;  %v21_v0 = vld [vmem:[#allocation2] sm:$0xff]  ;;  %s137_s18 = smov 1   ;;  %s138_s19 = smov 127   ;;  %v22_v1 = vlaneseq }
  0x13   :  { %27 = vrot.lane.b32.xlu0 %v21_v0, %s137_s18  ;;  %s139_s0 = smov 2   ;;  %s140_s20 = smov 126  }
  0x14   :  { %v23_v2 = vand.u32 127, %v22_v1  ;;  %s141_s21 = smov [#allocation5]  }
  0x15   :  { %s73_s22 = sshll.u32 %s141_s21, 4  ;;  %s74_s22 = int_to_ptr.vmem [resolvable:$true] %s73_s22 }
  0x16   :  { %vm24_vm0 = vcmp.ge.s32.totalorder %v23_v2, 2  ;;  %vm25_vm1 = vcmp.lt.s32.totalorder %v23_v2, 18  ;;  %s110_s23 = scalar_lea.vmem %s74_s22, 128  ;;  %p115_p9 = scmp.lt.s32.totalorder %s74_s22, %s74_s22 }
  0x17   :  { %30 = vrot.lane.b32.xlu0 %v21_v0, %s138_s19  ;;  %vm166_vm2 = vmand %vm24_vm0, %vm25_vm1  ;;  %p111_p8 = scmp.ne.s32.totalorder %s74_s22, %s110_s23  ;;  %p116_p10 = scmp.lt.s32.totalorder %s110_s23, %s110_s23 }
  0x19   :  { %p117_p11 = por %p116_p10, %p115_p9 }
  0x1b   :  { %p118_p12 = pnand %p117_p11, %p111_p8 }
  0x85   :  { %v28_v3 = vpop.permute.xlu0 %27 }
  0x86   :  { %v29_v4 = vmax.f32 %v21_v0, %v28_v3 }
  0x89   :  { %v31_v5 = vpop.permute.xlu0 %30 }
  0x8a   :  { %v32_v7 = vmax.f32 %v29_v4, %v31_v5 }
  0x8c   :  { %v33_v8 = vsel %vm166_vm2, %v32_v7, 0.0 }
  0x8d   :  { %34 = vrot.lane.b32.xlu1 %v33_v8, %s137_s18 }
  0x91   :  { %37 = vrot.lane.b32.xlu1 %v33_v8, %s138_s19 }
  0xff   :  { %v35_v9 = vpop.permute.xlu1 %34 }
 0x100   :  { %v36_v10 = vmin.f32 %v33_v8, %v35_v9 }
 0x103   :  { %v38_v11 = vpop.permute.xlu1 %37 }
 0x104   :  { %v39_v12 = vmin.f32 %v36_v10, %v38_v11 }
 0x106   :  { %v40_v13 = vsel %vm166_vm2, %v39_v12, 0.0 }
 0x107   :  { %44 = vrot.lane.b32.xlu1 %v40_v13, %s137_s18  ;;  %41 = vrot.lane.b32.xlu0 %v40_v13, %s139_s0 }
 0x10b   :  { %50 = vrot.lane.b32.xlu1 %v40_v13, %s140_s20  ;;  %47 = vrot.lane.b32.xlu0 %v40_v13, %s138_s19 }
 0x179   :  { %v45_v14 = vpop.permute.xlu1 %44  ;;  %v42_v15 = vpop.permute.xlu0 %41 }
 0x17a   :  { %v43_v16 = vmin.f32 %v40_v13, %v42_v15 }
 0x17c   :  { %v46_v17 = vmin.f32 %v43_v16, %v45_v14 }
 0x17d   :  { %v48_v18 = vpop.permute.xlu0 %47  ;;  %v51_v20 = vpop.permute.xlu1 %50 }
 0x17e   :  { %v49_v19 = vmin.f32 %v46_v17, %v48_v18 }
 0x180   :  { %v52_v21 = vmin.f32 %v49_v19, %v51_v20 }
 0x182   :  { %v53_v22 = vsel %vm166_vm2, %v52_v21, 0.0 }
 0x183   :  { %57 = vrot.lane.b32.xlu1 %v53_v22, %s137_s18  ;;  %54 = vrot.lane.b32.xlu0 %v53_v22, %s139_s0 }
 0x187   :  { %63 = vrot.lane.b32.xlu1 %v53_v22, %s140_s20  ;;  %60 = vrot.lane.b32.xlu0 %v53_v22, %s138_s19 }
 0x1f5   :  { %v58_v23 = vpop.permute.xlu1 %57  ;;  %v55_v24 = vpop.permute.xlu0 %54 }
 0x1f6   :  { %v56_v25 = vmax.f32 %v53_v22, %v55_v24 }
 0x1f8   :  { %v59_v26 = vmax.f32 %v56_v25, %v58_v23 }
 0x1f9   :  { %v61_v27 = vpop.permute.xlu0 %60  ;;  %v64_v29 = vpop.permute.xlu1 %63 }
 0x1fa   :  { %v62_v28 = vmax.f32 %v59_v26, %v61_v27 }
 0x1fc   :  { %v65_v30 = vmax.f32 %v62_v28, %v64_v29 }
 0x1fe   :  { %66 = vst [vmem:[#allocation5] sm:$0xff] %v65_v30 }
 0x1ff   :  { %121 = shalt.err (!%p118_p12)
}
 0x200   :  { %s122_s26 = scalar_lea.hbm %s195_s1, 128 }
 0x201   :  { %p123_p13 = scmp.ne.s32.totalorder %s195_s1, %s122_s26  ;;  %p126_p0 = scmp.lt.u32.totalorder %s122_s26, %s195_s1 }
 0x203   :  { %p128_p1 = pnand %p126_p0, %p123_p13 }
 0x205   :  { %131 = shalt.err (!%p128_p1)
}
 0x206   :  { %76 = dma.vmem_to_hbm [thread:$0]  %s74_s22, 128, %s195_s1, [#allocation4]  }
 0x207   :  { %134 = dma.done.wait [#allocation4], 128  }
 0x208   :  { %135 = vsyncadd [#allocation4], 4294967168 }
 0x209   :  { %80 = vsyncpa [#allocation3], 1 }
 0x20a   :  { %81 = vsyncpa [#allocation4], 1 }

</bundles_post_ra>
